<compile_context>
chip_gen: v7x
topology: tpu7x:2x2x1
jax: 0.10.0
libtpu: 0.0.40
codegen_flags: <defaults>
</compile_context>

<pallas_src>
import math

import jax
import jax.numpy as jnp
import numpy as np
from jax.experimental import pallas as pl
from jax.experimental.pallas import tpu as pltpu


# ----------------------------- in-kernel helpers -----------------------------

def _gelu_tanh(x):
    # tanh-based GELU; tanh goes to the EUP slot (free alongside MXU/VALU).
    c = 0.7978845608028654  # sqrt(2/pi)
    return 0.5 * x * (1.0 + jnp.tanh(c * (x + 0.044715 * x * x * x)))


# --------------------------------- kernel ------------------------------------

def _mlp_kernel(x_ref, w1_ref, b1_ref, w2_ref, b2_ref, out_ref):
    """Grid = (token tiles [parallel], mlp_dim tiles [arbitrary / reduction]).

    Per step (i, j):
      h    = gelu( (TM,H) @ (H,TN) + b1[TN] )    # fc1 column tile, bf16 MXU
      out += (TM,TN) @ (TN,H)                    # fc2 row tile, f32 accumulate
    The output tile is resident across j (index map ignores j); it is
    initialized with the fc2 bias at j == 0.
    """
    j = pl.program_id(1)

    @pl.when(j == 0)
    def _():
        out_ref[...] = jnp.broadcast_to(b2_ref[...], out_ref.shape)

    # bf16 MXU operands, f32 accumulation.
    h = jnp.dot(x_ref[...], w1_ref[...],
                preferred_element_type=jnp.float32) + b1_ref[...]
    h = _gelu_tanh(h)
    out_ref[...] += jnp.dot(h.astype(jnp.bfloat16), w2_ref[...],
                            preferred_element_type=jnp.float32)


# -------------------------------- wrapper ------------------------------------

def _round_up(x, m):
    return ((x + m - 1) // m) * m


def _pad_axis(a, axis, target):
    pad = target - a.shape[axis]
    if pad == 0:
        return a
    widths = [(0, 0)] * a.ndim
    widths[axis] = (0, pad)
    return jnp.pad(a, widths)


def mlp_forward(x, w1, b1, w2, b2, *, tile_m=128, tile_n=256):
    """ViT Mlp forward: gelu(x @ w1 + b1) @ w2 + b2  (dropout = identity).

    x : (B, N, H) float32
    w1: (H, mlp_dim)   (torch fc1.weight.T)
    b1: (mlp_dim,)
    w2: (mlp_dim, H)   (torch fc2.weight.T)
    b2: (H,)
    """
    B, N, H = x.shape
    MD = w1.shape[1]
    M = B * N

    # Lane-dense padding: last dims -> multiples of 128; token dim -> tile_m.
    Hp = _round_up(H, 128)
    MDp = _round_up(MD, 128)
    tn = tile_n
    if MDp % tn != 0:
        tn = 256 if MDp % 256 == 0 else 128
    tm = min(tile_m, _round_up(M, 8))
    Mp = _round_up(M, tm)

    # Cast activations/weights to bf16 in the same pass as the padding copy
    # (halves HBM->VMEM DMA bytes; MXU runs bf16 either way).
    x2 = _pad_axis(_pad_axis(x.reshape(M, H), 1, Hp), 0, Mp).astype(jnp.bfloat16)
    w1p = _pad_axis(_pad_axis(w1, 0, Hp), 1, MDp).astype(jnp.bfloat16)
    w2p = _pad_axis(_pad_axis(w2, 0, MDp), 1, Hp).astype(jnp.bfloat16)
    b1p = _pad_axis(b1.reshape(1, MD).astype(jnp.float32), 1, MDp)
    b2p = _pad_axis(b2.reshape(1, H).astype(jnp.float32), 1, Hp)

    grid = (Mp // tm, MDp // tn)

    out = pl.pallas_call(
        _mlp_kernel,
        out_shape=jax.ShapeDtypeStruct((Mp, Hp), jnp.float32),
        grid=grid,
        in_specs=[
            pl.BlockSpec((tm, Hp), lambda i, j: (i, 0)),   # x tile (reused over j)
            pl.BlockSpec((Hp, tn), lambda i, j: (0, j)),   # w1 column tile (bf16)
            pl.BlockSpec((1, tn), lambda i, j: (0, j)),    # b1 tile
            pl.BlockSpec((tn, Hp), lambda i, j: (j, 0)),   # w2 row tile (bf16)
            pl.BlockSpec((1, Hp), lambda i, j: (0, 0)),    # b2 (constant)
        ],
        out_specs=pl.BlockSpec((tm, Hp), lambda i, j: (i, 0)),  # resident acc
        compiler_params=pltpu.CompilerParams(
            dimension_semantics=("parallel", "arbitrary")),
    )(x2, w1p, b1p, w2p, b2p)

    return out[:M, :H].reshape(B, N, H)


# ---------------------------- pure-JAX reference ------------------------------

def mlp_reference(x, w1, b1, w2, b2):
    h = jnp.dot(x, w1) + b1
    h = jax.nn.gelu(h, approximate=False)   # exact erf GELU == torch F.gelu default
    return jnp.dot(h, w2) + b2


# ---------------------------------- main --------------------------------------

if __name__ == "__main__":
    # Small ViT-like shapes (lane-dense: hidden and mlp_dim are multiples of 128;
    # grid = (2 token tiles, 2 mlp_dim tiles) so tiling/accumulation is exercised).
    B, N, H, MLP_DIM = 2, 128, 128, 512

    key = jax.random.PRNGKey(0)
    kx, k1, k2, k3, k4 = jax.random.split(key, 5)

    # Match Mlp._init_weights: xavier_uniform weights, normal(std=1e-6) biases.
    lim1 = math.sqrt(6.0 / (H + MLP_DIM))
    lim2 = math.sqrt(6.0 / (MLP_DIM + H))
    w1 = jax.random.uniform(k1, (H, MLP_DIM), jnp.float32, -lim1, lim1)
    b1 = 1e-6 * jax.random.normal(k2, (MLP_DIM,), jnp.float32)
    w2 = jax.random.uniform(k3, (MLP_DIM, H), jnp.float32, -lim2, lim2)
    b2 = 1e-6 * jax.random.normal(k4, (H,), jnp.float32)
    x = jax.random.normal(kx, (B, N, H), jnp.float32)

    out = jax.block_until_ready(mlp_forward(x, w1, b1, w2, b2))

    ref = mlp_reference(x, w1, b1, w2, b2)
    # Tolerance accounts for bf16 MXU operands (f32 accumulation) + tanh GELU.
    np.testing.assert_allclose(np.asarray(out), np.asarray(ref),
                               rtol=3e-2, atol=3e-2)
    print("KERNEL_OK")
</pallas_src>

<mosaic_0001>
module attributes {stable_mosaic.version = 11 : i64} {
  func.func @_mlp_kernel(%arg0: i32, %arg1: i32, %arg2: memref<128x128xbf16, #tpu.memory_space<vmem>>, %arg3: memref<128x256xbf16, #tpu.memory_space<vmem>>, %arg4: memref<1x256xf32, #tpu.memory_space<vmem>>, %arg5: memref<256x128xbf16, #tpu.memory_space<vmem>>, %arg6: memref<1x128xf32, #tpu.memory_space<vmem>>, %arg7: memref<128x128xf32, #tpu.memory_space<vmem>>) attributes {dimension_semantics = [#tpu.dimension_semantics<parallel>, #tpu.dimension_semantics<arbitrary>], iteration_bounds = array<i64: 2, 2>, scalar_prefetch = 0 : i64, scratch_operands = 0 : i64, tpu.core_type = #tpu.core_type<tc>, window_params = [{transform_indices = @transform_0, window_bounds = array<i64: 128, 128>}, {transform_indices = @transform_1, window_bounds = array<i64: 128, 256>}, {transform_indices = @transform_2, window_bounds = array<i64: 1, 256>}, {transform_indices = @transform_3, window_bounds = array<i64: 256, 128>}, {pipeline_mode = #tpu.pipeline_mode<synchronous>, transform_indices = @transform_4, window_bounds = array<i64: 1, 128>}, {transform_indices = @transform_5, window_bounds = array<i64: 128, 128>}]} {
    %c0_i32 = arith.constant 0 : i32
    %0 = arith.cmpi eq, %arg1, %c0_i32 : i32
    %1 = arith.extui %0 : i1 to i32
    %c0_i32_0 = arith.constant 0 : i32
    %2 = arith.cmpi ne, %1, %c0_i32_0 : i32
    scf.if %2 {
      %c0_17 = arith.constant 0 : index
      %c0_18 = arith.constant 0 : index
      %28 = vector.load %arg6[%c0_17, %c0_18] : memref<1x128xf32, #tpu.memory_space<vmem>>, vector<1x128xf32>
      %29 = vector.shape_cast %28 : vector<1x128xf32> to vector<1x128xf32>
      %30 = vector.broadcast %29 : vector<1x128xf32> to vector<128x128xf32>
      %c0_19 = arith.constant 0 : index
      %c0_20 = arith.constant 0 : index
      %31 = vector.load %arg7[%c0_19, %c0_20] : memref<128x128xf32, #tpu.memory_space<vmem>>, vector<128x128xf32>
      tpu.vector_store %arg7[%c0_19, %c0_20], %30 {strides = array<i32>} : memref<128x128xf32, #tpu.memory_space<vmem>>, vector<128x128xf32>,
    } else {
    }
    %c0 = arith.constant 0 : index
    %c0_1 = arith.constant 0 : index
    %3 = vector.load %arg2[%c0, %c0_1] : memref<128x128xbf16, #tpu.memory_space<vmem>>, vector<128x128xbf16>
    %c0_2 = arith.constant 0 : index
    %c0_3 = arith.constant 0 : index
    %4 = vector.load %arg3[%c0_2, %c0_3] : memref<128x256xbf16, #tpu.memory_space<vmem>>, vector<128x256xbf16>
    %cst = arith.constant dense<0.000000e+00> : vector<128x256xf32>
    %5 = tpu.matmul %3, %4, %cst {dimension_numbers = #tpu.dot_dimension_numbers<[1], [0], [0], [1], [0, 0, 1, 1], [], []>} : vector<128x128xbf16>, vector<128x256xbf16>, vector<128x256xf32> -> vector<128x256xf32>
    %c0_4 = arith.constant 0 : index
    %c0_5 = arith.constant 0 : index
    %6 = vector.load %arg4[%c0_4, %c0_5] : memref<1x256xf32, #tpu.memory_space<vmem>>, vector<1x256xf32>
    %7 = vector.broadcast %6 : vector<1x256xf32> to vector<128x256xf32>
    %8 = arith.addf %5, %7 : vector<128x256xf32>
    %cst_6 = arith.constant 5.000000e-01 : f32
    %9 = vector.broadcast %cst_6 : f32 to vector<128x256xf32>
    %10 = arith.mulf %9, %8 : vector<128x256xf32>
    %cst_7 = arith.constant 4.471500e-02 : f32
    %11 = vector.broadcast %cst_7 : f32 to vector<128x256xf32>
    %12 = arith.mulf %11, %8 : vector<128x256xf32>
    %13 = arith.mulf %12, %8 : vector<128x256xf32>
    %14 = arith.mulf %13, %8 : vector<128x256xf32>
    %15 = arith.addf %8, %14 : vector<128x256xf32>
    %cst_8 = arith.constant 0.797884583 : f32
    %16 = vector.broadcast %cst_8 : f32 to vector<128x256xf32>
    %17 = arith.mulf %16, %15 : vector<128x256xf32>
    %18 = math.tanh %17 : vector<128x256xf32>
    %cst_9 = arith.constant 1.000000e+00 : f32
    %19 = vector.broadcast %cst_9 : f32 to vector<128x256xf32>
    %20 = arith.addf %19, %18 : vector<128x256xf32>
    %21 = arith.mulf %10, %20 : vector<128x256xf32>
    %c0_10 = arith.constant 0 : index
    %c0_11 = arith.constant 0 : index
    %22 = vector.load %arg7[%c0_10, %c0_11] : memref<128x128xf32, #tpu.memory_space<vmem>>, vector<128x128xf32>
    %23 = arith.truncf %21 : vector<128x256xf32> to vector<128x256xbf16>
    %c0_12 = arith.constant 0 : index
    %c0_13 = arith.constant 0 : index
    %24 = vector.load %arg5[%c0_12, %c0_13] : memref<256x128xbf16, #tpu.memory_space<vmem>>, vector<256x128xbf16>
    %cst_14 = arith.constant dense<0.000000e+00> : vector<128x128xf32>
    %25 = tpu.matmul %23, %24, %cst_14 {dimension_numbers = #tpu.dot_dimension_numbers<[1], [0], [0], [1], [0, 0, 1, 1], [], []>} : vector<128x256xbf16>, vector<256x128xbf16>, vector<128x128xf32> -> vector<128x128xf32>
    %26 = arith.addf %22, %25 : vector<128x128xf32>
    %c0_15 = arith.constant 0 : index
    %c0_16 = arith.constant 0 : index
    %27 = vector.load %arg7[%c0_15, %c0_16] : memref<128x128xf32, #tpu.memory_space<vmem>>, vector<128x128xf32>
    tpu.vector_store %arg7[%c0_15, %c0_16], %26 {strides = array<i32>} : memref<128x128xf32, #tpu.memory_space<vmem>>, vector<128x128xf32>,
    return
  }
  func.func @transform_0(%arg0: i32, %arg1: i32) -> (i32, i32) {
    %c0_i32 = arith.constant 0 : i32
    %c0_i32_0 = arith.constant 0 : i32
    return %arg0, %c0_i32 : i32, i32
  }
  func.func @transform_1(%arg0: i32, %arg1: i32) -> (i32, i32) {
    %c0_i32 = arith.constant 0 : i32
    %c0_i32_0 = arith.constant 0 : i32
    return %c0_i32, %arg1 : i32, i32
  }
  func.func @transform_2(%arg0: i32, %arg1: i32) -> (i32, i32) {
    %c0_i32 = arith.constant 0 : i32
    %c0_i32_0 = arith.constant 0 : i32
    return %c0_i32, %arg1 : i32, i32
  }
  func.func @transform_3(%arg0: i32, %arg1: i32) -> (i32, i32) {
    %c0_i32 = arith.constant 0 : i32
    %c0_i32_0 = arith.constant 0 : i32
    return %arg1, %c0_i32 : i32, i32
  }
  func.func @transform_4(%arg0: i32, %arg1: i32) -> (i32, i32) {
    %c0_i32 = arith.constant 0 : i32
    %c0_i32_0 = arith.constant 0 : i32
    %c0_i32_1 = arith.constant 0 : i32
    return %c0_i32, %c0_i32_0 : i32, i32
  }
  func.func @transform_5(%arg0: i32, %arg1: i32) -> (i32, i32) {
    %c0_i32 = arith.constant 0 : i32
    %c0_i32_0 = arith.constant 0 : i32
    return %arg0, %c0_i32 : i32, i32
  }
}

</mosaic_0001>

<bundles_post_ra>
// kernel: tpu_custom_call.1
= control target key start
LH: loop header
LB: loop body
LE: loop exit
PB: predicated region body
PF: predicated region fallthrough
CT: control target
= control target key end

     0   :  { %s2754_s0 = inlined_call_operand.hbm [shape: bf16[256,128], index: 0, kind: input, shape index: {}]   ;;  %s2755_s1 = inlined_call_operand.hbm [shape: bf16[128,512], index: 1, kind: input, shape index: {}]   ;;  %s2756_s2 = inlined_call_operand.vmem [shape: f32[1,512], index: 2, kind: input, shape index: {}]   ;;  %s2757_s3 = inlined_call_operand.hbm [shape: bf16[512,128], index: 3, kind: input, shape index: {}]   ;;  %s2758_s4 = inlined_call_operand.vmem [shape: f32[1,128], index: 4, kind: input, shape index: {}]   ;;  %s2759_s5 = inlined_call_operand.hbm [shape: f32[256,128], index: 5, kind: output, shape index: {}]  }
   0x1   :  { %2772 = sst [smem:[#allocation20_spill]] %s2755_s1 }
   0x2   :  { %2773 = sst [smem:[#allocation21_spill]] %s2758_s4 }
   0x3   :  { %2774 = sst [smem:[#allocation22_spill]] %s2759_s5 }
   0x4   :  { %10 = vsyncpa [#allocation3], 0 }
   0x5   :  { %12 = vsyncpa [#allocation3 + $0x1], 0 }
   0x6   :  { %13 = vsyncpa [#allocation6], 0 }
   0x7   :  { %15 = vsyncpa [#allocation6 + $0x1], 0 }
   0x8   :  { %16 = vsyncpa [#allocation4], 0 }
   0x9   :  { %18 = vsyncpa [#allocation4 + $0x1], 0  ;;  %s2021_s18 = smov 0   ;;  %s2023_s19 = smov 0  }
   0xa   :  { %s2025_s20 = smov 0   ;;  %s2027_s21 = smov 0  }
   0xb   :  { %s2029_s22 = smov 0   ;;  %s2031_s23 = smov 0  }
   0xc   :  { %s2033_s24 = smov 0   ;;  %s2035_s25 = smov 0  }
   0xd   :  { %s2037_s26 = smov 0   ;;  %s2039_s27 = smov 0  }
   0xe   :  { %s2041_s28 = smov 0  }
   0xf LB: > { %2775 = sst [smem:[#allocation12_spill]] %s1945_s20  ;;  %s33_s29 = sadd.s32 1, %s1969_s26  ;;  %s1977_s28 = sphi %s2041_s28, %s24_s28   ;;  %s1973_s27 = sphi %s2039_s27, %s2813_s27   ;;  %s1969_s26 = sphi %s2037_s26, %s2819_s26   ;;  %s1965_s25 = sphi %s2035_s25, %s2811_s25   ;;  %s1961_s24 = sphi %s2033_s24, %s2818_s24   ;;  %s1957_s23 = sphi %s2031_s23, %s2810_s23   ;;  %s1953_s22 = sphi %s2029_s22, %s2817_s22   ;;  %s1949_s21 = sphi %s2027_s21, %s2816_s21   ;;  %s1945_s20 = sphi %s2025_s20, %s2808_s20   ;;  %s1941_s19 = sphi %s2023_s19, %s2815_s19   ;;  %s1937_s18 = sphi %s2021_s18, %s2814_s18  }
  0x10   : > { %2776 = sst [smem:[#allocation13_spill]] %s1957_s23  ;;  %p2762_p0 = scmp.eq.s32.totalorder %s1977_s28, 0 }
  0x11   : > { %2777 = sst [smem:[#allocation14_spill]] %s1965_s25  ;;  %p2078_p1 = scmp.ge.s32.totalorder %s33_s29, 2 }
  0x12   : > { %2778 = sst [smem:[#allocation15_spill]] %s1973_s27  ;;  %s69_s6 = sadd.s32 1, %s1945_s20 }
  0x13   : > { %p76_p2 = scmp.ne.s32.totalorder %s1945_s20, %s1941_s19  ;;  %s2821_s29 = smov (%p2078_p1, %s33_s29), 0 }
  0x14   : > { %2780 = sst [smem:[#allocation16_spill]] %s2821_s29  ;;  %s66_s7 = ssub.s32 %s1969_s26, %s2821_s29 }
  0x15   : > { %p78_p4 = por %p76_p2, %p2762_p0  ;;  %p2761_p5 = scmp.lt.s32.totalorder %s1977_s28, 4 }
  0x16   : > { %p67_p6 = scmp.eq.s32.totalorder %s66_s7, 0  ;;  %s229_s8 = sand.u32 1, %s1977_s28  }
  0x17   : > { %s231_s9 = sand.u32 1, %s1945_s20   ;;  %s1462_s12 = sshll.u32 %s1969_s26, 7 }
  0x18   : > { %s2099_s10 = scalar_select %p67_p6, %s1945_s20, %s69_s6  }
  0x19   : > { %s2101_s11 = sshll.u32 %s231_s9, 7  ;;  %s2782_s1 = sld [smem:[#allocation20_spill]] }
  0x1a   : > { %2781 = sst [smem:[#allocation17_spill]] %s2099_s10  ;;  %s233_s16 = scalar_lea.vmem [#allocation5], %s2101_s11 }
  0x1b   : > { %s240_s17 = sshll.u32 %s233_s16, 4  ;;  %p2112_p7 = pnand %p2761_p5, %p78_p4  ;;  %s2116_s17 = int_to_ptr.vmem [resolvable:$true] %s240_s17 }
  0x1c   : > { %s2119_s6 = scalar_lea.sflag [#allocation6], %s229_s8 }
  0x1d   : > { %p2763_p10 = pneg %p2112_p7 }
  0x1f   : > { %s2107_s15 = scalar_lea.hbm %s2782_s1, %s1462_s12  ;;  %s1766_s14 = scalar_lea.hbm %s2782_s1, 4096 }
  0x20   : > { %s1761_s9 = scalar_lea.hbm %s2107_s15, 2048  ;;  %p1767_p13 = scmp.lt.u32.totalorder %s2107_s15, %s2782_s1 }
  0x21   : > { %p1762_p9 = scmp.ne.s32.totalorder %s2107_s15, %s1761_s9  ;;  %p1768_p2 = scmp.lt.u32.totalorder %s1766_s14, %s1761_s9 }
  0x22   : > { %p1770_p6 = scmp.lt.u32.totalorder %s1761_s9, %s2107_s15 }
  0x23   : > { %p1764_p11 = pnand %p2763_p10, %p1762_p9  ;;  %p1769_p4 = por %p1768_p2, %p1767_p13 }
  0x25   : > { %p1765_p12 = pneg %p1764_p11  ;;  %p1771_p5 = por %p1770_p6, %p1769_p4 }
  0x27   : > { %p1772_p3 = pnand %p1771_p5, %p1765_p12 }
  0x29   : > { %1775 = shalt.err (!%p1772_p3)
}
  0x2a   : > { %s1776_s8 = scalar_lea.vmem %s2116_s17, 2048  ;;  %s1979_s12 = smov [#allocation5]  }
  0x2b   : > { %p1777_p9 = scmp.ne.s32.totalorder %s2116_s17, %s1776_s8  ;;  %s1781_s13 = sshll.u32 %s1979_s12, 4  ;;  %s1782_s13 = int_to_ptr.vmem [resolvable:$false] %s1781_s13 }
  0x2c   : > { %s1783_s29 = scalar_lea.vmem %s1782_s13, 4096  ;;  %p1784_p8 = scmp.lt.s32.totalorder %s2116_s17, %s1782_s13 }
  0x2d   : > { %p1779_p11 = pnand %p1777_p9, %p2763_p10  ;;  %p1785_p13 = scmp.lt.s32.totalorder %s1783_s29, %s1776_s8 }
  0x2f   : > { %p1780_p0 = pneg %p1779_p11  ;;  %p1786_p2 = por %p1785_p13, %p1784_p8 }
  0x31   : > { %p1787_p4 = pnand %p1786_p2, %p1780_p0 }
  0x33   : > { %1790 = shalt.err (!%p1787_p4)
}
  0x34   : > { %s1980_s9 = smov 256   ;;  %s1981_s14 = smov 128  }
  0x35   : > { %s1982_s16 = smov 8   ;;  %p277_p0 = scmp.lt.s32.totalorder %s1977_s28, 5 }
  0x36   : > { %1543 = dma.hbm_to_vmem [thread:$0]  (!%p2112_p7), %s2107_s15, 2048, %s2116_s17, %s2119_s6, %s1980_s9, %s1981_s14, %s1982_s16  }
  0x37   : > { %p2784_p3 = scmp.ge.s32.totalorder %s1977_s28, 1  ;;  %s2155_s12 = sadd.s32 4294967295, %s1977_s28  }
  0x38   : > { %s1396_s13 = sadd.s32 4294967294, %s1977_s28   ;;  %s36_s29 = sadd.s32 1, %s1973_s27 }
  0x39   : > { %p2150_p5 = pnand %p2784_p3, %p277_p0  ;;  %s43_s1 = sadd.s32 1, %s1957_s23 }
  0x3a   : > { %s2823_s29 = smov (!%p2078_p1, %s36_s29), %s1973_s27  ;;  %p50_p8 = scmp.ne.s32.totalorder %s1957_s23, %s1953_s22 }
  0x3b   : > { %s2785_s8 = scalar_select %p2150_p5, 1, 0 }
  0x3c   : > { %p56_p12 = scmp.ne.s32.totalorder %s1953_s22, %s1949_s21  ;;  %p38_p6 = scmp.ge.s32.totalorder %s2823_s29, 2 }
  0x3d   : > { %p57_p9 = scmp.eq.s32.totalorder %s2155_s12, 0  ;;  %p2786_p11 = scmp.eq.s32.totalorder %s1977_s28, 0 }
  0x3e   : > { %p179_p2 = scmp.eq.s32.totalorder %s2155_s12, 3  ;;  %s2825_s29 = smov (%p38_p6, %s2823_s29), 0 }
  0x3f   : > { %p2170_p13 = por %p2786_p11, %p50_p8  ;;  %2788 = sst [smem:[#allocation18_spill]] %s2825_s29 }
  0x40   : > { %p2180_p1 = por %p57_p9, %p56_p12  ;;  %p2790_p4 = scmp.ne.s32.totalorder %s1941_s19, %s1937_s18 }
  0x41   : > { %s40_s9 = ssub.s32 %s1973_s27, %s2825_s29  ;;  %p2193_p3 = por %p179_p2, %p50_p8 }
  0x42   : > { %s2789_s30 = scalar_select %p2180_p1, 1, 0 }
  0x43   : > { %p2187_p0 = por %p2790_p4, %p57_p9  ;;  %p41_p11 = scmp.eq.s32.totalorder %s40_s9, 0 }
  0x44   : > { %s2792_s14 = scalar_select %p2193_p3, 1, 0 }
  0x45   : > { %s2791_s17 = scalar_select %p2187_p0, 1, 0 }
  0x46   : > { %p185_p10 = scmp.eq.s32.totalorder %s1396_s13, 3  ;;  %s208_s16 = sand.u32 1, %s1957_s23  }
  0x47   : > { %s1461_s10 = sshll.u32 %s1973_s27, 10  ;;  %s1399_s18 = sshll.u32 %s208_s16, 6 }
  0x48   : > { %s2200_s20 = scalar_select %p41_p11, %s1957_s23, %s43_s1  }
  0x49   : > { %p2205_p6 = por %p185_p10, %p56_p12  ;;  %s2212_s29 = scalar_lea.hbm %s2754_s0, %s1461_s10 }
  0x4a   : > { %2793 = sst [smem:[#allocation19_spill]] %s2200_s20  ;;  %p2795_p8 = scmp.lt.s32.totalorder %s1977_s28, 4 }
  0x4b   : > { %s2794_s5 = scalar_select %p2205_p6, 1, 0 }
  0x4c   : > { %p2218_p9 = pnand %p2795_p8, %p2170_p13  ;;  %s212_s13 = scalar_lea.vmem [#allocation2], %s1399_s18 }
  0x4d   : > { %s219_s9 = sshll.u32 %s212_s13, 4  ;;  %s2224_s27 = scalar_lea.sflag [#allocation3], %s208_s16  ;;  %s2222_s9 = int_to_ptr.vmem [resolvable:$true] %s219_s9 }
  0x4e   : > { %s1791_s4 = scalar_lea.hbm %s2212_s29, 1024  ;;  %p1793_p12 = pneg %p2218_p9 }
  0x4f   : > { %p1792_p10 = scmp.ne.s32.totalorder %s2212_s29, %s1791_s4  ;;  %s1796_s15 = scalar_lea.hbm %s2754_s0, 2048 }
  0x50   : > { %p1797_p13 = scmp.lt.u32.totalorder %s2212_s29, %s2754_s0  ;;  %p1798_p11 = scmp.lt.u32.totalorder %s1796_s15, %s1791_s4 }
  0x51   : > { %p1794_p2 = pnand %p1793_p12, %p1792_p10  ;;  %p1800_p6 = scmp.lt.u32.totalorder %s1791_s4, %s2212_s29 }
  0x52   : > { %p1799_p8 = por %p1798_p11, %p1797_p13 }
  0x53   : > { %p1795_p4 = pneg %p1794_p2 }
  0x54   : > { %p1801_p3 = por %p1800_p6, %p1799_p8 }
  0x56   : > { %p1802_p0 = pnand %p1801_p3, %p1795_p4 }
  0x58   : > { %1805 = shalt.err (!%p1802_p0)
}
  0x59   : > { %s1806_s16 = scalar_lea.vmem %s2222_s9, 1024  ;;  %s1983_s18 = smov [#allocation2]  }
  0x5a   : > { %p1807_p10 = scmp.ne.s32.totalorder %s2222_s9, %s1806_s16  ;;  %s1811_s13 = sshll.u32 %s1983_s18, 4  ;;  %s1812_s13 = int_to_ptr.vmem [resolvable:$false] %s1811_s13 }
  0x5b   : > { %s1813_s20 = scalar_lea.vmem %s1812_s13, 2048  ;;  %p1814_p5 = scmp.lt.s32.totalorder %s2222_s9, %s1812_s13 }
  0x5c   : > { %p1809_p2 = pnand %p1807_p10, %p1793_p12  ;;  %p1815_p13 = scmp.lt.s32.totalorder %s1813_s20, %s1806_s16 }
  0x5e   : > { %p1810_p1 = pneg %p1809_p2  ;;  %p1816_p11 = por %p1815_p13, %p1814_p5 }
  0x60   : > { %p1817_p6 = pnand %p1816_p11, %p1810_p1 }
  0x62   : > { %1820 = shalt.err (!%p1817_p6)
}
  0x63   : > { %s1984_s23 = smov 64   ;;  %s1985_s4 = smov 4  }
  0x64   : > { %1540 = dma.hbm_to_vmem [thread:$0]  (!%p2218_p9), %s2212_s29, 1024, %s2222_s9, %s2224_s27, %s1984_s23, %s1984_s23, %s1985_s4  }
  0x65   : > { %s1463_s25 = sshll.u32 %s1969_s26, 11  ;;  %s262_s10 = scalar_lea.vmem [#allocation7], %s2101_s11 }
  0x66   : > { %s269_s15 = sshll.u32 %s262_s10, 4  ;;  %s2260_s13 = scalar_lea.hbm %s2757_s3, %s1463_s25  ;;  %s2262_s15 = int_to_ptr.vmem [resolvable:$true] %s269_s15 }
  0x67   : > { %s1821_s20 = scalar_lea.hbm %s2260_s13, 2048  ;;  %p2797_p1 = pneg %p2112_p7 }
  0x68   : > { %p1822_p5 = scmp.ne.s32.totalorder %s2260_s13, %s1821_s20  ;;  %s1826_s29 = scalar_lea.hbm %s2757_s3, 4096 }
  0x69   : > { %p1827_p9 = scmp.lt.u32.totalorder %s2260_s13, %s2757_s3  ;;  %p1828_p12 = scmp.lt.u32.totalorder %s1826_s29, %s1821_s20 }
  0x6a   : > { %p1824_p0 = pnand %p1822_p5, %p2797_p1  ;;  %p1830_p8 = scmp.lt.u32.totalorder %s1821_s20, %s2260_s13 }
  0x6b   : > { %p1829_p4 = por %p1828_p12, %p1827_p9 }
  0x6c   : > { %p1825_p3 = pneg %p1824_p0 }
  0x6d   : > { %p1831_p10 = por %p1830_p8, %p1829_p4 }
  0x6f   : > { %p1832_p2 = pnand %p1831_p10, %p1825_p3 }
  0x71   : > { %1835 = shalt.err (!%p1832_p2)
}
  0x72   : > { %s1836_s25 = scalar_lea.vmem %s2262_s15, 2048  ;;  %p2798_p11 = pmov %p2797_p1 }
  0x73   : > { %p1837_p13 = scmp.ne.s32.totalorder %s2262_s15, %s1836_s25  ;;  %s1986_s10 = smov [#allocation7]  }
  0x74   : > { %s1841_s16 = sshll.u32 %s1986_s10, 4  ;;  %s1842_s16 = int_to_ptr.vmem [resolvable:$false] %s1841_s16 }
  0x75   : > { %p1839_p6 = pnand %p1837_p13, %p2798_p11  ;;  %s1843_s18 = scalar_lea.vmem %s1842_s16, 4096 }
  0x76   : > { %p1844_p1 = scmp.lt.s32.totalorder %s2262_s15, %s1842_s16  ;;  %p1845_p0 = scmp.lt.s32.totalorder %s1843_s18, %s1836_s25 }
  0x77   : > { %p1840_p5 = pneg %p1839_p6 }
  0x78   : > { %p1846_p9 = por %p1845_p0, %p1844_p1 }
  0x7a   : > { %p1847_p12 = pnand %p1846_p9, %p1840_p5 }
  0x7c   : > { %1850 = shalt.err (!%p1847_p12)
}
  0x7d   : > { %1546 = dma.hbm_to_vmem [thread:$0]  (!%p2112_p7), %s2260_s13, 2048, %s2262_s15, %s2119_s6, %s1984_s23, %s1984_s23, %s1985_s4  }
  0x7e   : > { %p2799_p3 = scmp.ne.s32.totalorder %s2785_s8, 0 }
  0x7f   : > { %s2294_s20 = sand.u32 (!%p2799_p3), 1, %s1953_s22   ;;  %p2800_p4 = scmp.ne.s32.totalorder (!%p2799_p3), %s2789_s30, 0 }
  0x80   : > { %281 = sbr.rel (%p2799_p3) target bundleno = 743 (0x2e7), region = 40  ;;  %s1409_s27 = sshll.u32 (!%p2799_p3), %s2294_s20, 6 }
  0x81   : > { %s284_s11 = scalar_lea.sflag (!%p2799_p3), [#allocation3], %s2294_s20  ;;  %s2298_s29 = scalar_lea.vmem (!%p2799_p3), [#allocation2], %s1409_s27 }
  0x87   : > { %1924 = dma.done.wait (%p2800_p4), %s284_s11, 1024  }
  0x88   : > { %1926 = vsyncadd (%p2800_p4), %s284_s11, 4294966272  ;;  %s292_s7 = sand.u32 1, %s2155_s12   ;;  %s294_s6 = sand.u32 1, %s1941_s19  }
  0x89   : > { %s1410_s8 = sshll.u32 %s294_s6, 7  ;;  %s293_s23 = scalar_lea.sflag [#allocation6], %s292_s7 }
  0x8a   : > { %s2306_s4 = scalar_lea.vmem [#allocation5], %s1410_s8  ;;  %p2801_p7 = scmp.ne.s32.totalorder %s2791_s17, 0 }
  0x8c   : > { %1928 = dma.done.wait (%p2801_p7), %s293_s23, 4096  }
  0x8d   : > { %1930 = vsyncadd (%p2801_p7), %s293_s23, 4294963200  ;;  %s1412_s15 = sshll.u32 %s2294_s20, 7  ;;  %s1413_s13 = sshll.u32 %s1961_s24, 1 }
  0x8e   : > { %p349_p8 = scmp.lt.s32.totalorder %s1413_s13, 3  ;;  %s2320_s9 = scalar_lea.vmem [#allocation7], %s1410_s8 }
  0x8f   : > { %s2322_s25 = scalar_lea.vmem [#allocation8], %s1412_s15  ;;  %p1414_p10 = scmp.ne.s32.totalorder %s1961_s24, 0 }
  0x90   : > { %s2827_s13 = smov (!%p349_p8, %s1413_s13), 3  ;;  %s2802_s16 = sld [smem:[#allocation21_spill]] (!%p1414_p10) }
  0x91   : > { %s351_s1 = scalar_lea.vmem %s2756_s2, %s2827_s13  ;;  %359 = sbr.rel (%p1414_p10) target bundleno = 159 (0x9f), region = 56 }
  0x96   : > { %v1415_v0 = vld [vmem:[%s2802_s16] ss:$0 sm:$0xff] (!%p1414_p10) }
  0x97   : > { %367 = vst [vmem:[%s2322_s25] sm:$0xff] (!%p1414_p10), %v1415_v0  ;;  %368 = vst [vmem:[%s2322_s25 + $0x8] sm:$0xff] (!%p1414_p10), %v1415_v0 }
  0x98   : > { %369 = vst [vmem:[%s2322_s25 + $0x10] sm:$0xff] %v1415_v0  ;;  %370 = vst [vmem:[%s2322_s25 + $0x18] sm:$0xff] %v1415_v0 }
  0x99   : > { %371 = vst [vmem:[%s2322_s25 + $0x20] sm:$0xff] %v1415_v0  ;;  %372 = vst [vmem:[%s2322_s25 + $0x28] sm:$0xff] %v1415_v0 }
  0x9a   : > { %373 = vst [vmem:[%s2322_s25 + $0x30] sm:$0xff] %v1415_v0  ;;  %374 = vst [vmem:[%s2322_s25 + $0x38] sm:$0xff] %v1415_v0 }
  0x9b   : > { %375 = vst [vmem:[%s2322_s25 + $0x40] sm:$0xff] %v1415_v0  ;;  %376 = vst [vmem:[%s2322_s25 + $0x48] sm:$0xff] %v1415_v0 }
  0x9c   : > { %377 = vst [vmem:[%s2322_s25 + $0x50] sm:$0xff] %v1415_v0  ;;  %378 = vst [vmem:[%s2322_s25 + $0x58] sm:$0xff] %v1415_v0 }
  0x9d   : > { %379 = vst [vmem:[%s2322_s25 + $0x60] sm:$0xff] %v1415_v0  ;;  %380 = vst [vmem:[%s2322_s25 + $0x68] sm:$0xff] %v1415_v0 }
  0x9e   : > { %381 = vst [vmem:[%s2322_s25 + $0x70] sm:$0xff] %v1415_v0  ;;  %382 = vst [vmem:[%s2322_s25 + $0x78] sm:$0xff] %v1415_v0 }
  0x9f PF: > { %v1649_v1 = vld [vmem:[%s2306_s4 + $0x4] ss:$8 sps:$4 sm:$0xff]   ;;  %v1651_v2 = vld [vmem:[%s2306_s4] ss:$8 sps:$4 sm:$0xff]   ;;  %v1987_v3 = vmov 0   ;;  %v1675_v20 = vld [vmem:[%s2298_s29 + $0x10] sm:$0xff]   ;;  %v417_v42 = vlaneseq }
  0xa0   : > { %587 = vmatprep.mubr.bf16.mxu0 %v1987_v3  ;;  %555 = vmatprep.subr.bf16.mxu0 %v1649_v1  ;;  %v1652_v4 = vld [vmem:[%s2306_s4 + $0x14] ss:$8 sps:$4 sm:$0xff]   ;;  %v1654_v5 = vld [vmem:[%s2306_s4 + $0x10] ss:$8 sps:$4 sm:$0xff]   ;;  %v1655_v6 = vld [vmem:[%s2306_s4 + $0x24] ss:$8 sps:$4 sm:$0xff]  }
  0xa1   : > { %556 = vmatpush1.bf16.msra.mxu0 %v1651_v2  ;;  %v1657_v7 = vld [vmem:[%s2306_s4 + $0x20] ss:$8 sps:$4 sm:$0xff]   ;;  %v1658_v8 = vld [vmem:[%s2306_s4 + $0x34] ss:$8 sps:$4 sm:$0xff]   ;;  %v1660_v9 = vld [vmem:[%s2306_s4 + $0x30] ss:$8 sps:$4 sm:$0xff]  }
  0xa2   : > { %557 = vmatprep.subr.bf16.mxu0 %v1652_v4  ;;  %v1661_v10 = vld [vmem:[%s2306_s4 + $0x44] ss:$8 sps:$4 sm:$0xff]   ;;  %v1663_v11 = vld [vmem:[%s2306_s4 + $0x40] ss:$8 sps:$4 sm:$0xff]   ;;  %v1664_v12 = vld [vmem:[%s2306_s4 + $0x54] ss:$8 sps:$4 sm:$0xff]  }
  0xa3   : > { %v1666_v13 = vld [vmem:[%s2306_s4 + $0x50] ss:$8 sps:$4 sm:$0xff]   ;;  %v1667_v14 = vld [vmem:[%s2306_s4 + $0x64] ss:$8 sps:$4 sm:$0xff]   ;;  %v1669_v15 = vld [vmem:[%s2306_s4 + $0x60] ss:$8 sps:$4 sm:$0xff]  }
  0xa4   : > { %v1670_v16 = vld [vmem:[%s2306_s4 + $0x74] ss:$8 sps:$4 sm:$0xff]   ;;  %v1672_v17 = vld [vmem:[%s2306_s4 + $0x70] ss:$8 sps:$4 sm:$0xff]   ;;  %v1673_v18 = vld [vmem:[%s2298_s29] sm:$0xff]   ;;  %v418_v43 = vshrl.u32 %v417_v42, 7 }
  0xa5   : > { %558 = vmatpush1.bf16.msra.mxu0 %v1654_v5  ;;  %v1674_v19 = vld [vmem:[%s2298_s29 + $0x8] sm:$0xff]   ;;  %v1676_v21 = vld [vmem:[%s2298_s29 + $0x18] sm:$0xff]   ;;  %v1677_v22 = vld [vmem:[%s2298_s29 + $0x20] sm:$0xff]   ;;  %s2803_s27 = sld [smem:[#allocation14_spill]]  ;;  %s1246_s4 = scalar_lea.sflag [#allocation4], %s2294_s20 }
  0xa6   : > { %559 = vmatprep.subr.bf16.mxu0 %v1655_v6  ;;  %v1678_v23 = vld [vmem:[%s2298_s29 + $0x28] sm:$0xff]   ;;  %v1679_v24 = vld [vmem:[%s2298_s29 + $0x30] sm:$0xff]   ;;  %v1680_v25 = vld [vmem:[%s2298_s29 + $0x38] sm:$0xff]   ;;  %v419_v44 = vsub.s32 0, %v418_v43  ;;  %v423_v46 = vsub.s32 1, %v418_v43  ;;  %s1259_s29 = sshll.u32 %s2322_s25, 4  ;;  %s2689_s29 = int_to_ptr.vmem [resolvable:$true] %s1259_s29 }
  0xa7   : > { %v1681_v26 = vld [vmem:[%s2320_s9 + $0x40] sm:$0xff]   ;;  %v1683_v28 = vld [vmem:[%s2320_s9 + $0x48] sm:$0xff]   ;;  %v1685_v30 = vld [vmem:[%s2320_s9 + $0x50] sm:$0xff]   ;;  %s2804_s8 = sld [smem:[#allocation22_spill]]  ;;  %s1851_s15 = scalar_lea.vmem %s2689_s29, 2048 }
  0xa8   : > { %v1682_v27 = vld [vmem:[%s2320_s9] sm:$0xff]   ;;  %1465 = vmatprep.subr.bf16.mxu1 %v1681_v26  ;;  %v1684_v29 = vld [vmem:[%s2320_s9 + $0x8] sm:$0xff]   ;;  %v1686_v31 = vld [vmem:[%s2320_s9 + $0x10] sm:$0xff]   ;;  %p1852_p2 = scmp.ne.s32.totalorder %s2689_s29, %s1851_s15  ;;  %p2805_p13 = scmp.ne.s32.totalorder %s2792_s14, 0 }
  0xa9   : > { %560 = vmatpush1.bf16.msra.mxu0 %v1657_v7  ;;  %1466 = vmatpush3.bf16.msra.mxu1 %v1682_v27  ;;  %v1687_v32 = vld [vmem:[%s2320_s9 + $0x58] sm:$0xff]   ;;  %v1689_v34 = vld [vmem:[%s2320_s9 + $0x60] sm:$0xff]   ;;  %v1691_v36 = vld [vmem:[%s2320_s9 + $0x68] sm:$0xff]   ;;  %s1988_s13 = smov [#allocation8]  }
  0xaa   : > { %561 = vmatprep.subr.bf16.mxu0 %v1658_v8  ;;  %1467 = vmatprep.subr.bf16.mxu1 %v1683_v28  ;;  %v1688_v33 = vld [vmem:[%s2320_s9 + $0x18] sm:$0xff]   ;;  %v1690_v35 = vld [vmem:[%s2320_s9 + $0x20] sm:$0xff]   ;;  %v1692_v37 = vld [vmem:[%s2320_s9 + $0x28] sm:$0xff]   ;;  %p1853_p11 = pnand %p1852_p2, %p2805_p13  ;;  %s1855_s30 = sshll.u32 %s1988_s13, 4  ;;  %s1856_s30 = int_to_ptr.vmem [resolvable:$false] %s1855_s30 }
  0xab   : > { %v1693_v38 = vld [vmem:[%s2320_s9 + $0x70] sm:$0xff]   ;;  %v1695_v40 = vld [vmem:[%s2320_s9 + $0x78] sm:$0xff]   ;;  %v415_v45 = vld [vmem:[%s351_s1] sm:$0x3]  ;;  %s1464_s11 = sshll.u32 %s2803_s27, 11  ;;  %s1857_s12 = scalar_lea.vmem %s1856_s30, 4096 }
  0xac   : > { %v1694_v39 = vld [vmem:[%s2320_s9 + $0x30] sm:$0xff]   ;;  %v1696_v41 = vld [vmem:[%s2320_s9 + $0x38] sm:$0xff]   ;;  %v2389_v47 = vrot.slane %v415_v45, %v419_v44  ;;  %v2391_v48 = vrot.slane %v415_v45, %v423_v46  ;;  %p1854_p6 = pneg %p1853_p11  ;;  %p1858_p5 = scmp.lt.s32.totalorder %s2689_s29, %s1856_s30 }
  0xad   : > { %562 = vmatpush1.bf16.msra.mxu0 %v1660_v9  ;;  %1468 = vmatpush3.bf16.msra.mxu1 %v1684_v29  ;;  %s2687_s23 = scalar_lea.hbm %s2804_s8, %s1464_s11  ;;  %p1859_p1 = scmp.lt.s32.totalorder %s1857_s12, %s1851_s15 }
  0xae   : > { %563 = vmatprep.subr.bf16.mxu0 %v1661_v10  ;;  %1469 = vmatprep.subr.bf16.mxu1 %v1685_v30 }
  0xaf   : > { %p1860_p0 = por %p1859_p1, %p1858_p5 }
  0xb1   : > { %564 = vmatpush1.bf16.msra.mxu0 %v1663_v11  ;;  %1470 = vmatpush3.bf16.msra.mxu1 %v1686_v31  ;;  %p1861_p9 = pnand %p1860_p0, %p1854_p6 }
  0xb2   : > { %565 = vmatprep.subr.bf16.mxu0 %v1664_v12  ;;  %1471 = vmatprep.subr.bf16.mxu1 %v1687_v32 }
  0xb5   : > { %566 = vmatpush1.bf16.msra.mxu0 %v1666_v13  ;;  %1472 = vmatpush3.bf16.msra.mxu1 %v1688_v33 }
  0xb6   : > { %567 = vmatprep.subr.bf16.mxu0 %v1667_v14  ;;  %1473 = vmatprep.subr.bf16.mxu1 %v1689_v34 }
  0xb9   : > { %568 = vmatpush1.bf16.msra.mxu0 %v1669_v15  ;;  %1474 = vmatpush3.bf16.msra.mxu1 %v1690_v35 }
  0xba   : > { %569 = vmatprep.subr.bf16.mxu0 %v1670_v16  ;;  %1475 = vmatprep.subr.bf16.mxu1 %v1691_v36 }
  0xbd   : > { %570 = vmatpush1.bf16.msra.mxu0 %v1672_v17  ;;  %1476 = vmatpush3.bf16.msra.mxu1 %v1692_v37 }
  0xbe   : > { %1477 = vmatprep.subr.bf16.mxu1 %v1693_v38 }
  0xc0   : > { %588 = vmatmul.mubr.bf16.vlgmr.msra.gmra.mrb[0].mxu0 %v1673_v18 }
  0xc1   : > { %597 = vmatprep.mubr.bf16.mxu0 %v1987_v3  ;;  %1478 = vmatpush3.bf16.msra.mxu1 %v1694_v39 }
  0xc2   : > { %1479 = vmatprep.subr.bf16.mxu1 %v1695_v40 }
  0xc5   : > { %1480 = vmatpush3.bf16.msra.mxu1 %v1696_v41 }
  0xc8   : > { %598 = vmatmul.mubr.bf16.gmra.mrb[4].mxu0 %v1674_v19 }
  0xc9   : > { %607 = vmatprep.mubr.bf16.mxu0 %v1987_v3 }
  0xd0   : > { %608 = vmatmul.mubr.bf16.gmra.mrb[8].mxu0 %v1675_v20 }
  0xd1   : > { %617 = vmatprep.mubr.bf16.mxu0 %v1987_v3 }
  0xd8   : > { %618 = vmatmul.mubr.bf16.gmra.mrb[12].mxu0 %v1676_v21 }
  0xd9   : > { %627 = vmatprep.mubr.bf16.mxu0 %v1987_v3 }
  0xe0   : > { %628 = vmatmul.mubr.bf16.gmra.mrb[16].mxu0 %v1677_v22 }
  0xe1   : > { %637 = vmatprep.mubr.bf16.mxu0 %v1987_v3 }
  0xe8   : > { %638 = vmatmul.mubr.bf16.gmra.mrb[20].mxu0 %v1678_v23 }
  0xe9   : > { %647 = vmatprep.mubr.bf16.mxu0 %v1987_v3 }
  0xf0   : > { %648 = vmatmul.mubr.bf16.gmra.mrb[24].mxu0 %v1679_v24 }
  0xf1   : > { %657 = vmatprep.mubr.bf16.mxu0 %v1987_v3 }
  0xf8   : > { %658 = vmatmul.mubr.bf16.gmra.mrb[28].mxu0 %v1680_v25 }
 0x193   : > { %v589_v49 = vpop.f32.mrb[0].mxu0 }
 0x194   : > { %v590_v50 = vadd.f32 %v589_v49, %v2389_v47  ;;  %v591_v51 = vpop.f32.mrb[1].mxu0 }
 0x195   : > { %v2395_v52 = vadd.f32 %v591_v51, %v2391_v48  ;;  %v593_v53 = vpop.f32.mrb[2].mxu0 }
 0x196   : > { %v700_v54 = vmul.f32 0.044715, %v590_v50  ;;  %v2398_v55 = vadd.f32 %v593_v53, %v2389_v47  ;;  %v595_v56 = vpop.f32.mrb[3].mxu0  ;;  %v668_v41 = vmul.f32 0.5, %v590_v50 }
 0x197   : > { %v701_v57 = vmul.f32 0.044715, %v2395_v52  ;;  %v2402_v58 = vadd.f32 %v595_v56, %v2391_v48  ;;  %v669_v51 = vmul.f32 0.5, %v2395_v52 }
 0x198   : > { %v732_v59 = vmul.f32 %v700_v54, %v590_v50  ;;  %v702_v60 = vmul.f32 0.044715, %v2398_v55 }
 0x199   : > { %v703_v61 = vmul.f32 0.044715, %v2402_v58  ;;  %v733_v62 = vmul.f32 %v701_v57, %v2395_v52 }
 0x19a   : > { %v764_v63 = vmul.f32 %v732_v59, %v590_v50  ;;  %v734_v0 = vmul.f32 %v702_v60, %v2398_v55 }
 0x19b   : > { %v599_v1 = vpop.f32.mrb[4].mxu0  ;;  %v735_v2 = vmul.f32 %v703_v61, %v2402_v58  ;;  %v765_v3 = vmul.f32 %v733_v62, %v2395_v52  ;;  %v671_v61 = vmul.f32 0.5, %v2402_v58  ;;  %v670_v62 = vmul.f32 0.5, %v2398_v55 }
 0x19c   : > { %v766_v4 = vmul.f32 %v734_v0, %v2398_v55  ;;  %v2412_v5 = vadd.f32 %v599_v1, %v2389_v47  ;;  %v601_v6 = vpop.f32.mrb[5].mxu0  ;;  %v796_v7 = vadd.f32 %v764_v63, %v590_v50 }
 0x19d   : > { %v602_v8 = vadd.f32 %v601_v6, %v2391_v48  ;;  %v603_v9 = vpop.f32.mrb[6].mxu0  ;;  %v767_v10 = vmul.f32 %v735_v2, %v2402_v58  ;;  %v797_v11 = vadd.f32 %v765_v3, %v2395_v52 }
 0x19e   : > { %v704_v12 = vmul.f32 0.044715, %v2412_v5  ;;  %v2419_v13 = vadd.f32 %v603_v9, %v2389_v47  ;;  %v605_v14 = vpop.f32.mrb[7].mxu0  ;;  %v798_v15 = vadd.f32 %v766_v4, %v2398_v55  ;;  %v828_v16 = vmul.f32 0.7978846, %v796_v7 }
 0x19f   : > { %v705_v17 = vmul.f32 0.044715, %v602_v8  ;;  %v606_v18 = vadd.f32 %v605_v14, %v2391_v48  ;;  %v799_v19 = vadd.f32 %v767_v10, %v2402_v58  ;;  %v829_v20 = vmul.f32 0.7978846, %v797_v11 }
 0x1a0   : > { %v736_v21 = vmul.f32 %v704_v12, %v2412_v5  ;;  %v706_v22 = vmul.f32 0.044715, %v2419_v13  ;;  %v830_v23 = vmul.f32 0.7978846, %v798_v15  ;;  %1697 = vtanh.f32 %v828_v16 }
 0x1a1   : > { %v737_v24 = vmul.f32 %v705_v17, %v602_v8  ;;  %v707_v25 = vmul.f32 0.044715, %v606_v18  ;;  %v831_v26 = vmul.f32 0.7978846, %v799_v19  ;;  %1699 = vtanh.f32 %v829_v20 }
 0x1a2   : > { %v768_v27 = vmul.f32 %v736_v21, %v2412_v5  ;;  %v738_v28 = vmul.f32 %v706_v22, %v2419_v13  ;;  %1701 = vtanh.f32 %v830_v23  ;;  %v2451_v2 = vmul.f32 0.5, %v602_v8 }
 0x1a3   : > { %v769_v29 = vmul.f32 %v737_v24, %v602_v8  ;;  %v739_v30 = vmul.f32 %v707_v25, %v606_v18  ;;  %v609_v31 = vpop.f32.mrb[8].mxu0  ;;  %1703 = vtanh.f32 %v831_v26  ;;  %v675_v9 = vmul.f32 0.5, %v606_v18 }
 0x1a4   : > { %v770_v32 = vmul.f32 %v738_v28, %v2419_v13  ;;  %v611_v33 = vpop.f32.mrb[9].mxu0  ;;  %v800_v38 = vadd.f32 %v768_v27, %v2412_v5  ;;  %v2434_v39 = vadd.f32 %v609_v31, %v2389_v47  ;;  %v674_v25 = vmul.f32 0.5, %v2419_v13 }
 0x1a5   : > { %v771_v34 = vmul.f32 %v739_v30, %v606_v18  ;;  %v2430_v35 = vadd.f32 %v611_v33, %v2391_v48  ;;  %v613_v36 = vpop.f32.mrb[10].mxu0  ;;  %v801_v37 = vadd.f32 %v769_v29, %v602_v8 }
 0x1a6   : > { %v615_v40 = vpop.f32.mrb[11].mxu0  ;;  %v802_v42 = vadd.f32 %v770_v32, %v2419_v13  ;;  %v2442_v49 = vadd.f32 %v613_v36, %v2389_v47  ;;  %v832_v53 = vmul.f32 0.7978846, %v800_v38  ;;  %v708_v60 = vmul.f32 0.044715, %v2434_v39 }
 0x1a7   : > { %v709_v43 = vmul.f32 0.044715, %v2430_v35  ;;  %v2439_v44 = vadd.f32 %v615_v40, %v2391_v48  ;;  %v803_v45 = vadd.f32 %v771_v34, %v606_v18  ;;  %v833_v46 = vmul.f32 0.7978846, %v801_v37 }
 0x1a8   : > { %v834_v54 = vmul.f32 0.7978846, %v802_v42  ;;  %v710_v58 = vmul.f32 0.044715, %v2442_v49  ;;  %v740_v8 = vmul.f32 %v708_v60, %v2434_v39  ;;  %v672_v18 = vmul.f32 0.5, %v2412_v5 }
 0x1a9   : > { %v741_v56 = vmul.f32 %v709_v43, %v2430_v35  ;;  %v711_v50 = vmul.f32 0.044715, %v2439_v44  ;;  %v835_v57 = vmul.f32 0.7978846, %v803_v45  ;;  %1705 = vtanh.f32 %v833_v46 }
 0x1aa   : > { %v1698_v59 = vpop.eup %1697  ;;  %1707 = vtanh.f32 %v832_v53  ;;  %v742_v27 = vmul.f32 %v710_v58, %v2442_v49  ;;  %v2473_v5 = vmul.f32 0.5, %v2434_v39  ;;  %v772_v36 = vmul.f32 %v740_v8, %v2434_v39 }
 0x1ab   : > { %v1700_v63 = vpop.eup %1699  ;;  %v743_v0 = vmul.f32 %v711_v50, %v2439_v44  ;;  %v619_v52 = vpop.f32.mrb[12].mxu0  ;;  %v892_v1 = vadd.f32 1.0, %v1698_v59  ;;  %1709 = vtanh.f32 %v835_v57  ;;  %v773_v4 = vmul.f32 %v741_v56, %v2430_v35 }
 0x1ac   : > { %v1702_v3 = vpop.eup %1701  ;;  %v621_v6 = vpop.f32.mrb[13].mxu0  ;;  %v893_v7 = vadd.f32 1.0, %v1700_v63  ;;  %1711 = vtanh.f32 %v834_v54  ;;  %v2461_v15 = vadd.f32 %v619_v52, %v2389_v47  ;;  %v2486_v46 = vmul.f32 0.5, %v2430_v35 }
 0x1ad   : > { %v1704_v10 = vpop.eup %1703  ;;  %v775_v55 = vmul.f32 %v743_v0, %v2439_v44  ;;  %v2457_v11 = vadd.f32 %v621_v6, %v2391_v48  ;;  %v623_v12 = vpop.f32.mrb[14].mxu0  ;;  %v894_v14 = vadd.f32 1.0, %v1702_v3  ;;  %v924_v21 = vmul.f32 %v892_v1, %v668_v41 }
 0x1ae   : > { %v625_v16 = vpop.f32.mrb[15].mxu0  ;;  %v895_v17 = vadd.f32 1.0, %v1704_v10  ;;  %v925_v23 = vmul.f32 %v893_v7, %v669_v51  ;;  %v805_v26 = vadd.f32 %v773_v4, %v2430_v35  ;;  %v712_v30 = vmul.f32 0.044715, %v2461_v15 }
 0x1af   : > { %v713_v19 = vmul.f32 0.044715, %v2457_v11  ;;  %v2466_v20 = vadd.f32 %v625_v16, %v2391_v48  ;;  %v926_v22 = vmul.f32 %v894_v14, %v670_v62  ;;  %v807_v29 = vadd.f32 %v775_v55, %v2439_v44 }
 0x1b0   : > { %v927_v24 = vmul.f32 %v895_v17, %v671_v61  ;;  %v837_v33 = vmul.f32 0.7978846, %v805_v26  ;;  %v2480_v37 = vadd.f32 %v623_v12, %v2389_v47  ;;  %v774_v53 = vmul.f32 %v742_v27, %v2442_v49 }
 0x1b1   : > { %v972_v28 = vpack.c.bf16 %v926_v22, %v924_v21  ;;  %v715_v31 = vmul.f32 0.044715, %v2466_v20  ;;  %v745_v13 = vmul.f32 %v713_v19, %v2457_v11  ;;  %v839_v40 = vmul.f32 0.7978846, %v807_v29 }
 0x1b2   : > { %v973_v32 = vpack.c.bf16 %v927_v24, %v925_v23  ;;  %1713 = vtanh.f32 %v837_v33  ;;  %v744_v59 = vmul.f32 %v712_v30, %v2461_v15  ;;  %v714_v0 = vmul.f32 0.044715, %v2480_v37 }
 0x1b3   : > { %v1706_v34 = vpop.eup %1705  ;;  %v629_v38 = vpop.f32.mrb[16].mxu0  ;;  %1715 = vtanh.f32 %v839_v40  ;;  %v747_v60 = vmul.f32 %v715_v31, %v2466_v20  ;;  %v777_v63 = vmul.f32 %v745_v13, %v2457_v11  ;;  %v804_v7 = vadd.f32 %v772_v36, %v2434_v39 }
 0x1b4   : > { %v1708_v41 = vpop.eup %1707  ;;  %v2483_v42 = vadd.f32 %v629_v38, %v2389_v47  ;;  %v631_v43 = vpop.f32.mrb[17].mxu0  ;;  %1148 = vmatprep.mubr.bf16.mxu1 %v973_v32  ;;  %v897_v45 = vadd.f32 1.0, %v1706_v34  ;;  %v806_v12 = vadd.f32 %v774_v53, %v2442_v49  ;;  %v746_v19 = vmul.f32 %v714_v0, %v2480_v37 }
 0x1b5   : > { %v1710_v51 = vpop.eup %1709  ;;  %v2490_v54 = vadd.f32 %v631_v43, %v2391_v48  ;;  %v633_v56 = vpop.f32.mrb[18].mxu0  ;;  %1149 = vmatmul.mubr.bf16.vlgmr.msra.gmra.mrb[0].mxu1 %v972_v28  ;;  %v896_v50 = vadd.f32 1.0, %v1708_v41  ;;  %v779_v14 = vmul.f32 %v747_v60, %v2466_v20  ;;  %v836_v17 = vmul.f32 0.7978846, %v804_v7 }
 0x1b6   : > { %v1712_v57 = vpop.eup %1711  ;;  %v2495_v61 = vadd.f32 %v633_v56, %v2389_v47  ;;  %v635_v35 = vpop.f32.mrb[19].mxu0  ;;  %v899_v62 = vadd.f32 1.0, %v1710_v51  ;;  %v716_v52 = vmul.f32 0.044715, %v2483_v42  ;;  %v929_v4 = vmul.f32 %v897_v45, %v2451_v2 }
 0x1b7   : > { %v898_v1 = vadd.f32 1.0, %v1712_v57  ;;  %v717_v3 = vmul.f32 0.044715, %v2490_v54  ;;  %v2504_v10 = vadd.f32 %v635_v35, %v2391_v48  ;;  %v928_v58 = vmul.f32 %v896_v50, %v672_v18 }
 0x1b8   : > { %v931_v6 = vmul.f32 %v899_v62, %v675_v9  ;;  %v718_v8 = vmul.f32 0.044715, %v2495_v61  ;;  %v679_v9 = vmul.f32 0.5, %v2439_v44  ;;  %v838_v39 = vmul.f32 0.7978846, %v806_v12 }
 0x1b9   : > { %v930_v55 = vmul.f32 %v898_v1, %v674_v25  ;;  %v776_v22 = vmul.f32 %v744_v59, %v2461_v15  ;;  %v748_v18 = vmul.f32 %v716_v52, %v2483_v42  ;;  %1717 = vtanh.f32 %v836_v17 }
 0x1ba   : > { %v975_v16 = vpack.c.bf16 %v931_v6, %v929_v4  ;;  %v749_v25 = vmul.f32 %v717_v3, %v2490_v54  ;;  %v719_v26 = vmul.f32 0.044715, %v2504_v10  ;;  %1719 = vtanh.f32 %v838_v39 }
 0x1bb   : > { %v639_v21 = vpop.f32.mrb[20].mxu0  ;;  %v974_v2 = vpack.c.bf16 %v930_v55, %v928_v58  ;;  %v750_v29 = vmul.f32 %v718_v8, %v2495_v61  ;;  %v678_v31 = vmul.f32 0.5, %v2442_v49  ;;  %v809_v32 = vadd.f32 %v777_v63, %v2457_v11 }
 0x1bc   : > { %v2514_v23 = vadd.f32 %v639_v21, %v2389_v47  ;;  %v641_v24 = vpop.f32.mrb[21].mxu0  ;;  %1156 = vmatprep.mubr.bf16.mxu1 %v975_v16  ;;  %v1714_v44 = vpop.eup %1713  ;;  %v811_v33 = vadd.f32 %v779_v14, %v2466_v20  ;;  %v778_v36 = vmul.f32 %v746_v19, %v2480_v37  ;;  %v2533_v41 = vmul.f32 %v748_v18, %v2483_v42 }
 0x1bd   : > { %v2519_v27 = vadd.f32 %v641_v24, %v2391_v48  ;;  %v643_v28 = vpop.f32.mrb[22].mxu0  ;;  %1157 = vmatmul.mubr.bf16.gmra.mrb[4].mxu1 %v974_v2  ;;  %v1716_v34 = vpop.eup %1715  ;;  %v901_v40 = vadd.f32 1.0, %v1714_v44  ;;  %v841_v45 = vmul.f32 0.7978846, %v809_v32  ;;  %v781_v51 = vmul.f32 %v749_v25, %v2490_v54 }
 0x1be   : > { %v645_v30 = vpop.f32.mrb[23].mxu0  ;;  %v2527_v13 = vadd.f32 %v643_v28, %v2389_v47  ;;  %v720_v43 = vmul.f32 0.044715, %v2514_v23  ;;  %v903_v49 = vadd.f32 1.0, %v1716_v34  ;;  %v751_v53 = vmul.f32 %v719_v26, %v2504_v10 }
 0x1bf   : > { %v2530_v38 = vadd.f32 %v645_v30, %v2391_v48  ;;  %v721_v56 = vmul.f32 0.044715, %v2519_v27  ;;  %v843_v50 = vmul.f32 0.7978846, %v811_v33  ;;  %v2540_v57 = vmul.f32 %v750_v29, %v2495_v61 }
 0x1c0   : > { %v933_v59 = vmul.f32 %v901_v40, %v2486_v46  ;;  %v935_v60 = vmul.f32 %v903_v49, %v679_v9  ;;  %1721 = vtanh.f32 %v841_v45  ;;  %v722_v35 = vmul.f32 0.044715, %v2527_v13 }
 0x1c1   : > { %v723_v62 = vmul.f32 0.044715, %v2530_v38  ;;  %v2546_v0 = vmul.f32 0.5, %v2457_v11  ;;  %1723 = vtanh.f32 %v843_v50  ;;  %v752_v52 = vmul.f32 %v720_v43, %v2514_v23 }
 0x1c2   : > { %v977_v4 = vpack.c.bf16 %v935_v60, %v933_v59  ;;  %v808_v46 = vadd.f32 %v776_v22, %v2461_v15  ;;  %v783_v6 = vmul.f32 %v751_v53, %v2504_v10  ;;  %v753_v7 = vmul.f32 %v721_v56, %v2519_v27 }
 0x1c3   : > { %v649_v63 = vpop.f32.mrb[24].mxu0  ;;  %v683_v55 = vmul.f32 0.5, %v2466_v20  ;;  %v810_v11 = vadd.f32 %v778_v36, %v2480_v37  ;;  %v1718_v12 = vpop.eup %1717  ;;  %v2564_v17 = vmul.f32 0.5, %v2461_v15  ;;  %v754_v2 = vmul.f32 %v722_v35, %v2527_v13 }
 0x1c4   : > { %v2550_v1 = vadd.f32 %v649_v63, %v2389_v47  ;;  %v651_v3 = vpop.f32.mrb[25].mxu0  ;;  %1164 = vmatprep.mubr.bf16.mxu1 %v977_v4  ;;  %v840_v19 = vmul.f32 0.7978846, %v808_v46  ;;  %v1720_v21 = vpop.eup %1719  ;;  %v755_v20 = vmul.f32 %v723_v62, %v2530_v38  ;;  %v900_v9 = vadd.f32 1.0, %v1718_v12 }
 0x1c5   : > { %v653_v58 = vpop.f32.mrb[26].mxu0  ;;  %v2558_v14 = vadd.f32 %v651_v3, %v2391_v48  ;;  %v842_v39 = vmul.f32 0.7978846, %v810_v11  ;;  %v2569_v22 = vmul.f32 %v752_v52, %v2514_v23  ;;  %v902_v18 = vadd.f32 1.0, %v1720_v21 }
 0x1c6   : > { %v2561_v8 = vadd.f32 %v653_v58, %v2389_v47  ;;  %v655_v16 = vpop.f32.mrb[27].mxu0  ;;  %1725 = vtanh.f32 %v840_v19  ;;  %v785_v25 = vmul.f32 %v753_v7, %v2519_v27  ;;  %v724_v15 = vmul.f32 0.044715, %v2550_v1 }
 0x1c7   : > { %v2572_v24 = vadd.f32 %v655_v16, %v2391_v48  ;;  %v682_v26 = vmul.f32 0.5, %v2480_v37  ;;  %1727 = vtanh.f32 %v842_v39  ;;  %v725_v28 = vmul.f32 0.044715, %v2558_v14 }
 0x1c8   : > { %v932_v44 = vmul.f32 %v900_v9, %v2473_v5  ;;  %v934_v29 = vmul.f32 %v902_v18, %v678_v31  ;;  %v813_v30 = vadd.f32 %v781_v51, %v2490_v54  ;;  %v786_v32 = vmul.f32 %v754_v2, %v2527_v13 }
 0x1c9   : > { %v787_v33 = vmul.f32 %v755_v20, %v2530_v38  ;;  %v726_v34 = vmul.f32 0.044715, %v2561_v8  ;;  %v815_v40 = vadd.f32 %v783_v6, %v2504_v10  ;;  %v727_v37 = vmul.f32 0.044715, %v2572_v24 }
 0x1ca   : > { %v1722_v43 = vpop.eup %1721  ;;  %v976_v49 = vpack.c.bf16 %v934_v29, %v932_v44  ;;  %v845_v31 = vmul.f32 0.7978846, %v813_v30  ;;  %v756_v51 = vmul.f32 %v724_v15, %v2550_v1  ;;  %v757_v35 = vmul.f32 %v725_v28, %v2558_v14 }
 0x1cb   : > { %v659_v36 = vpop.f32.mrb[28].mxu0  ;;  %v1724_v53 = vpop.eup %1723  ;;  %v905_v50 = vadd.f32 1.0, %v1722_v43  ;;  %v847_v60 = vmul.f32 0.7978846, %v815_v40  ;;  %v758_v3 = vmul.f32 %v726_v34, %v2561_v8  ;;  %v685_v46 = vmul.f32 0.5, %v2490_v54 }
 0x1cc   : > { %v2586_v45 = vadd.f32 %v659_v36, %v2389_v47  ;;  %v661_v5 = vpop.f32.mrb[29].mxu0  ;;  %1165 = vmatmul.mubr.bf16.gmra.mrb[8].mxu1 %v976_v49  ;;  %v907_v62 = vadd.f32 1.0, %v1724_v53  ;;  %1729 = vtanh.f32 %v845_v31  ;;  %v759_v6 = vmul.f32 %v727_v37, %v2572_v24 }
 0x1cd   : > { %v2590_v56 = vadd.f32 %v661_v5, %v2391_v48  ;;  %v663_v59 = vpop.f32.mrb[30].mxu0  ;;  %1731 = vtanh.f32 %v847_v60  ;;  %v937_v58 = vmul.f32 %v905_v50, %v2546_v0  ;;  %v812_v16 = vadd.f32 %v2533_v41, %v2483_v42 }
 0x1ce   : > { %v2594_v63 = vadd.f32 %v663_v59, %v2389_v47  ;;  %v665_v52 = vpop.f32.mrb[31].mxu0  ;;  %v939_v11 = vmul.f32 %v907_v62, %v683_v55  ;;  %v728_v47 = vmul.f32 0.044715, %v2586_v45  ;;  %v788_v54 = vmul.f32 %v756_v51, %v2550_v1 }
 0x1cf   : > { %v2598_v4 = vadd.f32 %v665_v52, %v2391_v48  ;;  %v729_v7 = vmul.f32 0.044715, %v2590_v56  ;;  %v814_v48 = vadd.f32 %v2540_v57, %v2495_v61  ;;  %v789_v21 = vmul.f32 %v757_v35, %v2558_v14 }
 0x1d0   : > { %v1726_v19 = vpop.eup %1725  ;;  %v979_v2 = vpack.c.bf16 %v939_v11, %v937_v58  ;;  %v687_v20 = vmul.f32 0.5, %v2504_v10  ;;  %v790_v55 = vmul.f32 %v758_v3, %v2561_v8  ;;  %v730_v9 = vmul.f32 0.044715, %v2594_v63 }
 0x1d1   : > { %v731_v12 = vmul.f32 0.044715, %v2598_v4  ;;  %v1728_v0 = vpop.eup %1727  ;;  %v904_v39 = vadd.f32 1.0, %v1726_v19  ;;  %v844_v18 = vmul.f32 0.7978846, %v812_v16  ;;  %v761_v41 = vmul.f32 %v729_v7, %v2590_v56 }
 0x1d2   : > { %1172 = vmatprep.mubr.bf16.mxu1 %v979_v2  ;;  %v906_v15 = vadd.f32 1.0, %v1728_v0  ;;  %v846_v28 = vmul.f32 0.7978846, %v814_v48  ;;  %v791_v44 = vmul.f32 %v759_v6, %v2572_v24  ;;  %v760_v29 = vmul.f32 %v728_v47, %v2586_v45 }
 0x1d3   : > { %v763_v57 = vmul.f32 %v731_v12, %v2598_v4  ;;  %1733 = vtanh.f32 %v844_v18  ;;  %v817_v10 = vadd.f32 %v785_v25, %v2519_v27  ;;  %v936_v30 = vmul.f32 %v904_v39, %v2564_v17 }
 0x1d4   : > { %v938_v34 = vmul.f32 %v906_v15, %v682_v26  ;;  %1735 = vtanh.f32 %v846_v28  ;;  %v819_v36 = vadd.f32 %v787_v33, %v2530_v38  ;;  %v762_v40 = vmul.f32 %v730_v9, %v2594_v63 }
 0x1d5   : > { %v849_v43 = vmul.f32 0.7978846, %v817_v10  ;;  %v816_v49 = vadd.f32 %v2569_v22, %v2514_v23  ;;  %v818_v37 = vadd.f32 %v786_v32, %v2527_v13  ;;  %v793_v31 = vmul.f32 %v761_v41, %v2590_v56 }
 0x1d6   : > { %v1730_v5 = vpop.eup %1729  ;;  %v978_v53 = vpack.c.bf16 %v938_v34, %v936_v30  ;;  %v795_v25 = vmul.f32 %v763_v57, %v2598_v4  ;;  %v851_v51 = vmul.f32 0.7978846, %v819_v36  ;;  %v821_v60 = vadd.f32 %v789_v21, %v2558_v14 }
 0x1d7   : > { %v1732_v17 = vpop.eup %1731  ;;  %v909_v26 = vadd.f32 1.0, %v1730_v5  ;;  %1737 = vtanh.f32 %v849_v43  ;;  %v848_v50 = vmul.f32 0.7978846, %v816_v49  ;;  %v850_v33 = vmul.f32 0.7978846, %v818_v37 }
 0x1d8   : > { %1173 = vmatmul.mubr.bf16.gmra.mrb[12].mxu1 %v978_v53  ;;  %v911_v59 = vadd.f32 1.0, %v1732_v17  ;;  %1739 = vtanh.f32 %v851_v51  ;;  %v823_v22 = vadd.f32 %v791_v44, %v2572_v24  ;;  %v853_v62 = vmul.f32 0.7978846, %v821_v60 }
 0x1d9   : > { %v941_v32 = vmul.f32 %v909_v26, %v685_v46  ;;  %1741 = vtanh.f32 %v848_v50  ;;  %v792_v3 = vmul.f32 %v760_v29, %v2586_v45  ;;  %v794_v6 = vmul.f32 %v762_v40, %v2594_v63 }
 0x1da   : > { %v943_v35 = vmul.f32 %v911_v59, %v687_v20  ;;  %1743 = vtanh.f32 %v850_v33  ;;  %v855_v52 = vmul.f32 0.7978846, %v823_v22  ;;  %v820_v7 = vadd.f32 %v788_v54, %v2550_v1 }
 0x1db   : > { %v822_v58 = vadd.f32 %v790_v55, %v2561_v8  ;;  %1745 = vtanh.f32 %v853_v62  ;;  %v825_v47 = vadd.f32 %v793_v31, %v2590_v56  ;;  %v827_v12 = vadd.f32 %v795_v25, %v2598_v4 }
 0x1dc   : > { %v981_v11 = vpack.c.bf16 %v943_v35, %v941_v32  ;;  %v684_v16 = vmul.f32 0.5, %v2483_v42  ;;  %1747 = vtanh.f32 %v855_v52  ;;  %v852_v48 = vmul.f32 0.7978846, %v820_v7 }
 0x1dd   : > { %v1734_v46 = vpop.eup %1733  ;;  %v854_v19 = vmul.f32 0.7978846, %v822_v58  ;;  %v686_v2 = vmul.f32 0.5, %v2495_v61  ;;  %v857_v54 = vmul.f32 0.7978846, %v825_v47  ;;  %v824_v9 = vadd.f32 %v792_v3, %v2586_v45 }
 0x1de   : > { %v1736_v21 = vpop.eup %1735  ;;  %1180 = vmatprep.mubr.bf16.mxu1 %v981_v11  ;;  %v908_v20 = vadd.f32 1.0, %v1734_v46  ;;  %v859_v0 = vmul.f32 0.7978846, %v827_v12  ;;  %1749 = vtanh.f32 %v852_v48  ;;  %v826_v39 = vadd.f32 %v794_v6, %v2594_v63 }
 0x1df   : > { %v910_v55 = vadd.f32 1.0, %v1736_v21  ;;  %1751 = vtanh.f32 %v854_v19  ;;  %v856_v15 = vmul.f32 0.7978846, %v824_v9  ;;  %v689_v44 = vmul.f32 0.5, %v2519_v27 }
 0x1e0   : > { %v940_v18 = vmul.f32 %v908_v20, %v684_v16  ;;  %1753 = vtanh.f32 %v857_v54  ;;  %v858_v57 = vmul.f32 0.7978846, %v826_v39  ;;  %v691_v30 = vmul.f32 0.5, %v2530_v38 }
 0x1e1   : > { %v1738_v41 = vpop.eup %1737  ;;  %v942_v42 = vmul.f32 %v910_v55, %v686_v2  ;;  %1755 = vtanh.f32 %v859_v0  ;;  %v688_v40 = vmul.f32 0.5, %v2514_v23  ;;  %v690_v5 = vmul.f32 0.5, %v2527_v13 }
 0x1e2   : > { %v1740_v28 = vpop.eup %1739  ;;  %v913_v61 = vadd.f32 1.0, %v1738_v41  ;;  %1757 = vtanh.f32 %v856_v15  ;;  %v693_v38 = vmul.f32 0.5, %v2558_v14  ;;  %v695_v50 = vmul.f32 0.5, %v2572_v24 }
 0x1e3   : > { %v1742_v29 = vpop.eup %1741  ;;  %v980_v10 = vpack.c.bf16 %v942_v42, %v940_v18  ;;  %v915_v34 = vadd.f32 1.0, %v1740_v28  ;;  %1759 = vtanh.f32 %v858_v57  ;;  %v692_v62 = vmul.f32 0.5, %v2550_v1  ;;  %v957_v18 = vld [vmem:[%s2322_s25 + $0x8] sm:$0xff] }
 0x1e4   : > { %v1744_v36 = vpop.eup %1743  ;;  %v912_v43 = vadd.f32 1.0, %v1742_v29  ;;  %v945_v49 = vmul.f32 %v913_v61, %v689_v44  ;;  %v694_v52 = vmul.f32 0.5, %v2561_v8  ;;  %v697_v14 = vmul.f32 0.5, %v2590_v56  ;;  %v958_v44 = vld [vmem:[%s2322_s25 + $0x10] sm:$0xff] }
 0x1e5   : > { %1181 = vmatmul.mubr.bf16.gmra.mrb[16].mxu1 %v980_v10  ;;  %v947_v37 = vmul.f32 %v915_v34, %v691_v30  ;;  %v914_v31 = vadd.f32 1.0, %v1744_v36  ;;  %v1746_v27 = vpop.eup %1745  ;;  %v699_v12 = vmul.f32 0.5, %v2598_v4  ;;  %v696_v1 = vmul.f32 0.5, %v2586_v45  ;;  %v956_v45 = vld [vmem:[%s2322_s25] sm:$0xff]  ;;  %v959_v30 = vld [vmem:[%s2322_s25 + $0x18] sm:$0xff] }
 0x1e6   : > { %v1748_v53 = vpop.eup %1747  ;;  %v944_v51 = vmul.f32 %v912_v43, %v688_v40  ;;  %v917_v26 = vadd.f32 1.0, %v1746_v27  ;;  %v698_v8 = vmul.f32 0.5, %v2594_v63 }
 0x1e7   : > { %v983_v25 = vpack.c.bf16 %v947_v37, %v945_v49  ;;  %v946_v17 = vmul.f32 %v914_v31, %v690_v5  ;;  %v919_v33 = vadd.f32 1.0, %v1748_v53  ;;  %v960_v37 = vld [vmem:[%s2322_s25 + $0x20] sm:$0xff]  ;;  %v961_v53 = vld [vmem:[%s2322_s25 + $0x28] sm:$0xff] }
 0x1e8   : > { %v1750_v23 = vpop.eup %1749  ;;  %v949_v22 = vmul.f32 %v917_v26, %v693_v38 }
 0x1e9   : > { %1188 = vmatprep.mubr.bf16.mxu1 %v983_v25  ;;  %v982_v59 = vpack.c.bf16 %v946_v17, %v944_v51  ;;  %v1752_v60 = vpop.eup %1751  ;;  %v951_v32 = vmul.f32 %v919_v33, %v695_v50  ;;  %v916_v35 = vadd.f32 1.0, %v1750_v23  ;;  %v962_v50 = vld [vmem:[%s2322_s25 + $0x30] sm:$0xff] }
 0x1ea   : > { %v1754_v13 = vpop.eup %1753  ;;  %v918_v3 = vadd.f32 1.0, %v1752_v60  ;;  %v963_v60 = vld [vmem:[%s2322_s25 + $0x38] sm:$0xff] }
 0x1eb   : > { %v1756_v6 = vpop.eup %1755  ;;  %v985_v7 = vpack.c.bf16 %v951_v32, %v949_v22  ;;  %v921_v58 = vadd.f32 1.0, %v1754_v13  ;;  %v948_v11 = vmul.f32 %v916_v35, %v692_v62 }
 0x1ec   : > { %v1758_v24 = vpop.eup %1757  ;;  %v950_v47 = vmul.f32 %v918_v3, %v694_v52  ;;  %v923_v46 = vadd.f32 1.0, %v1756_v6  ;;  %v964_v52 = vld [vmem:[%s2322_s25 + $0x40] sm:$0xff] }
 0x1ed   : > { %1189 = vmatmul.mubr.bf16.gmra.mrb[20].mxu1 %v982_v59  ;;  %v1760_v16 = vpop.eup %1759  ;;  %v920_v48 = vadd.f32 1.0, %v1758_v24  ;;  %v953_v21 = vmul.f32 %v921_v58, %v697_v14  ;;  %v965_v14 = vld [vmem:[%s2322_s25 + $0x48] sm:$0xff] }
 0x1ee   : > { %1196 = vmatprep.mubr.bf16.mxu1 %v985_v7  ;;  %v984_v19 = vpack.c.bf16 %v950_v47, %v948_v11  ;;  %v955_v56 = vmul.f32 %v923_v46, %v699_v12  ;;  %v922_v2 = vadd.f32 1.0, %v1760_v16  ;;  %v966_v46 = vld [vmem:[%s2322_s25 + $0x50] sm:$0xff] }
 0x1ef   : > { %v952_v54 = vmul.f32 %v920_v48, %v696_v1  ;;  %v967_v48 = vld [vmem:[%s2322_s25 + $0x58] sm:$0xff] }
 0x1f0   : > { %v987_v20 = vpack.c.bf16 %v955_v56, %v953_v21  ;;  %v954_v0 = vmul.f32 %v922_v2, %v698_v8 }
 0x1f2   : > { %v986_v4 = vpack.c.bf16 %v954_v0, %v952_v54  ;;  %v968_v54 = vld [vmem:[%s2322_s25 + $0x60] sm:$0xff] }
 0x1f5   : > { %1197 = vmatmul.mubr.bf16.gmra.mrb[24].mxu1 %v984_v19 }
 0x1f6   : > { %1204 = vmatprep.mubr.bf16.mxu1 %v987_v20 }
 0x1fd   : > { %1205 = vmatmul.mubr.bf16.gmra.mrb[28].mxu1 %v986_v4 }
 0x288   : > { %v1481_v55 = vpop.f32.mrb[0].mxu1 }
 0x289   : > { %v1482_v63 = vpop.f32.mrb[1].mxu1 }
 0x28a   : > { %v1483_v9 = vadd.f32 %v1482_v63, %v1481_v55  ;;  %v1484_v39 = vpop.f32.mrb[2].mxu1 }
 0x28b   : > { %v1485_v41 = vpop.f32.mrb[3].mxu1 }
 0x28c   : > { %v1213_v42 = vadd.f32 %v1483_v9, %v956_v45  ;;  %v1486_v15 = vadd.f32 %v1485_v41, %v1484_v39  ;;  %v969_v45 = vld [vmem:[%s2322_s25 + $0x68] sm:$0xff] }
 0x28e   : > { %1229 = vst [vmem:[%s2322_s25] sm:$0xff] %v1213_v42  ;;  %v1214_v57 = vadd.f32 %v1486_v15, %v957_v18  ;;  %v970_v42 = vld [vmem:[%s2322_s25 + $0x70] sm:$0xff] }
 0x290   : > { %1230 = vst [vmem:[%s2322_s25 + $0x8] sm:$0xff] %v1214_v57  ;;  %v1487_v28 = vpop.f32.mrb[4].mxu1 }
 0x291   : > { %v1488_v61 = vpop.f32.mrb[5].mxu1 }
 0x292   : > { %v1489_v29 = vadd.f32 %v1488_v61, %v1487_v28  ;;  %v1490_v10 = vpop.f32.mrb[6].mxu1 }
 0x293   : > { %v1491_v34 = vpop.f32.mrb[7].mxu1 }
 0x294   : > { %v1215_v36 = vadd.f32 %v1489_v29, %v958_v44  ;;  %v1492_v40 = vadd.f32 %v1491_v34, %v1490_v10  ;;  %v971_v44 = vld [vmem:[%s2322_s25 + $0x78] sm:$0xff] }
 0x296   : > { %1231 = vst [vmem:[%s2322_s25 + $0x10] sm:$0xff] %v1215_v36  ;;  %v1216_v43 = vadd.f32 %v1492_v40, %v959_v30 }
 0x298   : > { %1232 = vst [vmem:[%s2322_s25 + $0x18] sm:$0xff] %v1216_v43 }
 0x29f   : > { %v1493_v49 = vpop.f32.mrb[8].mxu1 }
 0x2a0   : > { %v1494_v5 = vpop.f32.mrb[9].mxu1 }
 0x2a1   : > { %v1495_v31 = vadd.f32 %v1494_v5, %v1493_v49  ;;  %v1496_v27 = vpop.f32.mrb[10].mxu1 }
 0x2a2   : > { %v1497_v25 = vpop.f32.mrb[11].mxu1 }
 0x2a3   : > { %v1217_v51 = vadd.f32 %v1495_v31, %v960_v37  ;;  %v1498_v17 = vadd.f32 %v1497_v25, %v1496_v27 }
 0x2a5   : > { %1233 = vst [vmem:[%s2322_s25 + $0x20] sm:$0xff] %v1217_v51  ;;  %v1218_v26 = vadd.f32 %v1498_v17, %v961_v53 }
 0x2a7   : > { %1234 = vst [vmem:[%s2322_s25 + $0x28] sm:$0xff] %v1218_v26 }
 0x2ab   : > { %v1499_v38 = vpop.f32.mrb[12].mxu1 }
 0x2ac   : > { %v1500_v33 = vpop.f32.mrb[13].mxu1 }
 0x2ad   : > { %v1501_v23 = vadd.f32 %v1500_v33, %v1499_v38  ;;  %v1502_v59 = vpop.f32.mrb[14].mxu1 }
 0x2ae   : > { %v1503_v22 = vpop.f32.mrb[15].mxu1 }
 0x2af   : > { %v1219_v32 = vadd.f32 %v1501_v23, %v962_v50  ;;  %v1504_v35 = vadd.f32 %v1503_v22, %v1502_v59 }
 0x2b1   : > { %1235 = vst [vmem:[%s2322_s25 + $0x30] sm:$0xff] %v1219_v32  ;;  %v1220_v13 = vadd.f32 %v1504_v35, %v963_v60 }
 0x2b3   : > { %1236 = vst [vmem:[%s2322_s25 + $0x38] sm:$0xff] %v1220_v13 }
 0x2b8   : > { %v1505_v62 = vpop.f32.mrb[16].mxu1 }
 0x2b9   : > { %v1506_v3 = vpop.f32.mrb[17].mxu1 }
 0x2ba   : > { %v1507_v6 = vadd.f32 %v1506_v3, %v1505_v62  ;;  %v1508_v7 = vpop.f32.mrb[18].mxu1 }
 0x2bb   : > { %v1509_v58 = vpop.f32.mrb[19].mxu1 }
 0x2bc   : > { %v1221_v24 = vadd.f32 %v1507_v6, %v964_v52  ;;  %v1510_v11 = vadd.f32 %v1509_v58, %v1508_v7 }
 0x2be   : > { %1237 = vst [vmem:[%s2322_s25 + $0x40] sm:$0xff] %v1221_v24  ;;  %v1222_v47 = vadd.f32 %v1510_v11, %v965_v14 }
 0x2c0   : > { %1238 = vst [vmem:[%s2322_s25 + $0x48] sm:$0xff] %v1222_v47  ;;  %v1511_v12 = vpop.f32.mrb[20].mxu1 }
 0x2c1   : > { %v1512_v16 = vpop.f32.mrb[21].mxu1 }
 0x2c2   : > { %v1513_v1 = vadd.f32 %v1512_v16, %v1511_v12  ;;  %v1514_v8 = vpop.f32.mrb[22].mxu1 }
 0x2c3   : > { %v1515_v19 = vpop.f32.mrb[23].mxu1 }
 0x2c4   : > { %v1223_v21 = vadd.f32 %v1513_v1, %v966_v46  ;;  %v1516_v56 = vadd.f32 %v1515_v19, %v1514_v8 }
 0x2c6   : > { %1239 = vst [vmem:[%s2322_s25 + $0x50] sm:$0xff] %v1223_v21  ;;  %v1224_v2 = vadd.f32 %v1516_v56, %v967_v48 }
 0x2c8   : > { %1240 = vst [vmem:[%s2322_s25 + $0x58] sm:$0xff] %v1224_v2  ;;  %v1517_v20 = vpop.f32.mrb[24].mxu1 }
 0x2c9   : > { %v1518_v0 = vpop.f32.mrb[25].mxu1 }
 0x2ca   : > { %v1519_v4 = vadd.f32 %v1518_v0, %v1517_v20  ;;  %v1520_v55 = vpop.f32.mrb[26].mxu1 }
 0x2cb   : > { %v1521_v63 = vpop.f32.mrb[27].mxu1 }
 0x2cc   : > { %v1225_v9 = vadd.f32 %v1519_v4, %v968_v54  ;;  %v1522_v39 = vadd.f32 %v1521_v63, %v1520_v55 }
 0x2ce   : > { %1241 = vst [vmem:[%s2322_s25 + $0x60] sm:$0xff] %v1225_v9  ;;  %v1226_v18 = vadd.f32 %v1522_v39, %v969_v45 }
 0x2d0   : > { %1242 = vst [vmem:[%s2322_s25 + $0x68] sm:$0xff] %v1226_v18  ;;  %v1523_v41 = vpop.f32.mrb[28].mxu1 }
 0x2d1   : > { %v1524_v15 = vpop.f32.mrb[29].mxu1 }
 0x2d2   : > { %v1525_v57 = vadd.f32 %v1524_v15, %v1523_v41  ;;  %v1526_v28 = vpop.f32.mrb[30].mxu1 }
 0x2d3   : > { %v1527_v61 = vpop.f32.mrb[31].mxu1 }
 0x2d4   : > { %v1227_v29 = vadd.f32 %v1525_v57, %v970_v42  ;;  %v1528_v10 = vadd.f32 %v1527_v61, %v1526_v28 }
 0x2d6   : > { %1243 = vst [vmem:[%s2322_s25 + $0x70] sm:$0xff] %v1227_v29  ;;  %v1228_v30 = vadd.f32 %v1528_v10, %v971_v44 }
 0x2d8   : > { %1244 = vst [vmem:[%s2322_s25 + $0x78] sm:$0xff] %v1228_v30 }
 0x2d9   : > { %1864 = shalt.err (!%p1861_p9)
}
 0x2da   : > { %s1865_s1 = scalar_lea.hbm %s2687_s23, 2048  ;;  %s1869_s17 = scalar_lea.hbm %s2804_s8, 4096 }
 0x2db   : > { %p1866_p12 = scmp.ne.s32.totalorder %s2687_s23, %s1865_s1  ;;  %p1870_p7 = scmp.lt.u32.totalorder %s2687_s23, %s2804_s8 }
 0x2dc   : > { %p1871_p8 = scmp.lt.u32.totalorder %s1869_s17, %s1865_s1  ;;  %p1873_p2 = scmp.lt.u32.totalorder %s1865_s1, %s2687_s23 }
 0x2dd   : > { %p1867_p3 = pnand %p1866_p12, %p2805_p13 }
 0x2de   : > { %p1872_p10 = por %p1871_p8, %p1870_p7 }
 0x2df   : > { %p1868_p4 = pneg %p1867_p3 }
 0x2e0   : > { %p1874_p11 = por %p1873_p2, %p1872_p10 }
 0x2e2   : > { %p1875_p6 = pnand %p1874_p11, %p1868_p4 }
 0x2e4   : > { %1878 = shalt.err (!%p1875_p6)
}
 0x2e5   : > { %s1989_s24 = smov 128   ;;  %s1990_s18 = smov 8  }
 0x2e6   : > { %1535 = dma.vmem_to_hbm [thread:$0]  (%p2805_p13), %s2689_s29, 2048, %s2687_s23, %s1246_s4, %s1989_s24, %s1989_s24, %s1990_s18  }
 0x2e7 PF: > { %p1552_p5 = scmp.ge.s32.totalorder %s1977_s28, 2  ;;  %s1274_s27 = sand.u32 1, %s1949_s21  }
 0x2e8   : > { %p2806_p1 = scmp.ne.s32.totalorder %s2794_s5, 0  ;;  %s1275_s11 = scalar_lea.sflag [#allocation4], %s1274_s27 }
 0x2ea   : > { %p1548_p0 = pnand %p1552_p5, %p2806_p1 }
 0x2ec   : > { %1932 = dma.done.wait (!%p1548_p0), %s1275_s11, 2048  }
 0x2ed   : > { %1934 = vsyncadd (!%p1548_p0), %s1275_s11, 4294965248  ;;  %s24_s28 = sadd.s32 1, %s1977_s28   ;;  %s2807_s7 = sld [smem:[#allocation12_spill]] }
 0x2ee   : > { %p21_p9 = scmp.ge.s32.totalorder %s24_s28, 6   ;;  %s2808_s20 = sld [smem:[#allocation17_spill]] }
 0x2ef   : > { %s2809_s14 = sld [smem:[#allocation13_spill]]  ;;  %s2810_s23 = sld [smem:[#allocation19_spill]] }
 0x2f0   : > { %s2811_s25 = sld [smem:[#allocation15_spill]]  ;;  %s2812_s29 = sld [smem:[#allocation16_spill]] }
 0x2f1   : > { %s2813_s27 = sld [smem:[#allocation18_spill]]  ;;  %s2814_s18 = smov %s1941_s19 }
 0x2f2   : > { %s2816_s21 = smov %s1953_s22  ;;  %s2818_s24 = smov %s1969_s26 }
 0x2f3   : > { %s2815_s19 = smov %s2807_s7  ;;  %23 = sbr.rel (!%p21_p9) target bundleno = 15 (0xf), region = 116 }
 0x2f5   : > { %s2817_s22 = smov %s2809_s14 }
 0x2f6   : > { %s2819_s26 = smov %s2812_s29 }
 0x2fa   :  { %1280 = vsyncpa [#allocation3], 1 }
 0x2fb   :  { %1282 = vsyncpa [#allocation3 + $0x1], 1 }
 0x2fc   :  { %1283 = vsyncpa [#allocation6], 1 }
 0x2fd   :  { %1285 = vsyncpa [#allocation6 + $0x1], 1 }
 0x2fe   :  { %1286 = vsyncpa [#allocation4], 1 }
 0x2ff   :  { %1288 = vsyncpa [#allocation4 + $0x1], 1 }

</bundles_post_ra>
